<compile_context>
chip_gen: v7x
topology: tpu7x:2x2x1
jax: 0.10.0
libtpu: 0.0.40
codegen_flags: <defaults>
</compile_context>

<pallas_src>
import functools

import jax
import jax.numpy as jnp
from jax.experimental import pallas as pl
from jax.experimental.pallas import tpu as pltpu


# ---------------------------------------------------------------------------
# Fused kernel: stem conv -> residual block -> GAP -> fc -> sigmoid gate mix
# ---------------------------------------------------------------------------
def _moe_fused_kernel(xc_ref, ws_ref, bs_ref, w1_ref, b1_ref, w2_ref, b2_ref,
                      wfc_ref, bfc_ref, o_ref, pad_ref, *, b_tile, length,
                      k_size, hidden, num_experts, num_classes):
    Bt, L = b_tile, length
    H = bs_ref.shape[-1]                      # 4 * hidden (gate + 3 experts stacked)
    halo = (k_size - 1) // 2
    out_pad = o_ref.shape[-1]

    # Zero ONLY the halo rows (interior is overwritten by every conv). Done
    # every grid step so it stays correct when the batch axis is split across
    # TensorCores ("parallel" semantics); cost is 2*halo rows, negligible.
    zrow = jnp.zeros((Bt, halo, H), pad_ref.dtype)
    pad_ref[:, :halo, :] = zrow
    pad_ref[:, halo + L:, :] = zrow

    def hidden_conv(h_blc, w_ref, b_ref):
        # 'same' conv over L for all stacked nets: K accumulated MXU matmuls
        # straight from the halo scratch — no im2col cols buffer in VMEM.
        # TODO(synk): a bf16 halo scratch would halve vld/vst bytes here; kept
        # f32 to avoid unaligned packed-sublane stores at offset `halo`.
        pad_ref[:, halo:halo + L, :] = h_blc
        acc = None
        for k in range(k_size):
            win = pad_ref[:, k:k + L, :].reshape(Bt * L, H).astype(jnp.bfloat16)
            d = jnp.dot(win, w_ref[k], preferred_element_type=jnp.float32)
            acc = d if acc is None else acc + d
        return (acc + b_ref[...]).reshape(Bt, L, H)

    # Stem conv: im2col windows of the tiny raw input are built in the wrapper
    # (already bf16); one matmul over the K*Cin contraction.
    xc = xc_ref[...].reshape(Bt * L, xc_ref.shape[-1])
    h = jnp.maximum(
        jnp.dot(xc, ws_ref[...], preferred_element_type=jnp.float32) + bs_ref[...],
        0.0).reshape(Bt, L, H)

    # Residual block: conv-ReLU, conv + skip, ReLU.
    h1 = jnp.maximum(hidden_conv(h, w1_ref, b1_ref), 0.0)
    h2 = jnp.maximum(hidden_conv(h1, w2_ref, b2_ref) + h, 0.0)

    # Global average pool (XLU reduce; 1/L is a trace-time constant) + fc heads.
    pooled = jnp.sum(h2, axis=1) * (1.0 / L)                    # (Bt, H)
    fc = (jnp.dot(pooled.astype(jnp.bfloat16), wfc_ref[...],
                  preferred_element_type=jnp.float32) + bfc_ref[...])

    # Gate sigmoid (EUP) + expert mix; build the full lane-dense slab in
    # registers and store it once (unmasked vst).
    g = jax.nn.sigmoid(fc[:, 0:num_experts])                    # (Bt, E)
    mix = jnp.zeros((Bt, num_classes), jnp.float32)
    for e in range(num_experts):
        off = (e + 1) * hidden
        mix = mix + g[:, e:e + 1] * fc[:, off:off + num_classes]
    slab = jnp.concatenate(
        [mix, jnp.zeros((Bt, out_pad - num_classes), jnp.float32)], axis=-1)
    o_ref[...] = slab.reshape(o_ref.shape)


# ---------------------------------------------------------------------------
# Per-generation sizing helpers
# ---------------------------------------------------------------------------
def _vmem_limit_bytes():
    """Scoped-VMEM limit per TPU generation (v7x: 64 MiB physical, v5e/v6e: 128)."""
    try:
        cap = int(pltpu.get_tpu_info().vmem_capacity_bytes)
    except Exception:                           # conservative fallback (v7x-safe)
        cap = 64 * 1024 * 1024
    return min((cap * 3) // 4, 96 * 1024 * 1024)


def _pick_b_tile(B, L, H, vmem_limit):
    """Largest divisor of B whose activation tile fits ~1/3 of the VMEM budget,
    targeting b_tile*L >= 512 rows (multiple of 256) for MXU M-occupancy."""
    row_bytes = 6 * H * 4                       # h/h1/h2 + halo scratch + accum (f32)
    max_rows = max(L, (vmem_limit // 3) // row_bytes)
    rows = min(max_rows, max(512, L))
    bt = max(1, min(B, rows // L))
    while B % bt:
        bt -= 1
    return bt


# ---------------------------------------------------------------------------
# Wrapper
# ---------------------------------------------------------------------------
def moe_forward(x_ncl, packed, *, num_classes, num_experts=3, b_tile=None):
    """x_ncl: (B, Cin, L) float32 (PyTorch Conv1d layout)."""
    B, Cin, L = x_ncl.shape
    H = packed["bs"].shape[-1]                  # 4 * hidden
    hidden = H // (num_experts + 1)
    K = packed["w1"].shape[0]
    out_pad = packed["wfc"].shape[1]
    halo = (K - 1) // 2

    vmem_limit = _vmem_limit_bytes()
    if b_tile is None:
        b_tile = _pick_b_tile(B, L, H, vmem_limit)
    assert B % b_tile == 0
    nb = B // b_tile

    # Stem im2col windows of the raw input, cast to bf16 (halves streamed DMA).
    # TODO(synk): at large L, build these windows in-kernel from a padded
    # (b_tile, L+2*halo, Cin) scratch so HBM reads stay 1x instead of Kx.
    x_nlc = jnp.transpose(x_ncl, (0, 2, 1))
    xp = jnp.pad(x_nlc, ((0, 0), (halo, halo), (0, 0)))
    x_cols = jnp.concatenate([xp[:, k:k + L, :] for k in range(K)],
                             axis=-1).astype(jnp.bfloat16)      # (B, L, K*Cin)

    args = (x_cols, packed["ws"], packed["bs"], packed["w1"], packed["b1"],
            packed["w2"], packed["b2"], packed["wfc"], packed["bfc"])

    flops = (2 * B * L * (K * Cin) * H          # stem conv
             + 2 * 2 * B * L * K * H * H        # two stacked hidden convs
             + 2 * B * H * out_pad)             # fc heads
    bytes_accessed = (sum(int(a.size) * a.dtype.itemsize for a in args)
                      + B * out_pad * 4)

    kernel = functools.partial(
        _moe_fused_kernel, b_tile=b_tile, length=L, k_size=K, hidden=hidden,
        num_experts=num_experts, num_classes=num_classes)

    const2 = lambda i: (0, 0)                   # weights stay VMEM-resident
    const3 = lambda i: (0, 0, 0)
    grid_spec = pltpu.PrefetchScalarGridSpec(
        num_scalar_prefetch=0,
        grid=(nb,),                             # batch tiles, auto-pipelined
        in_specs=[
            pl.BlockSpec((b_tile, L, K * Cin), lambda i: (i, 0, 0)),   # streamed
            pl.BlockSpec((K * Cin, H), const2),
            pl.BlockSpec((1, H), const2),
            pl.BlockSpec((K, H, H), const3),
            pl.BlockSpec((1, H), const2),
            pl.BlockSpec((K, H, H), const3),
            pl.BlockSpec((1, H), const2),
            pl.BlockSpec((H, out_pad), const2),
            pl.BlockSpec((1, out_pad), const2),
        ],
        out_specs=pl.BlockSpec((1, b_tile, out_pad), lambda i: (i, 0, 0)),
        scratch_shapes=[pltpu.VMEM((b_tile, L + 2 * halo, H), jnp.float32)],
    )

    out = pl.pallas_call(
        kernel,
        out_shape=jax.ShapeDtypeStruct((nb, b_tile, out_pad), jnp.float32),
        grid_spec=grid_spec,
        compiler_params=pltpu.CompilerParams(
            dimension_semantics=("parallel",),  # v7x: both TensorCores get work
            vmem_limit_bytes=vmem_limit),
        cost_estimate=pl.CostEstimate(flops=flops,
                                      transcendentals=B * num_experts,
                                      bytes_accessed=bytes_accessed),
    )(*args)
    return out.reshape(B, out_pad)[:, :num_classes]


# ---------------------------------------------------------------------------
# Deterministic parameter construction + packing
# ---------------------------------------------------------------------------
def init_resnet1d(key, cin, hidden, k, out_dim):
    ks = jax.random.split(key, 8)
    s = 0.1
    return dict(
        w_stem=s * jax.random.normal(ks[0], (k, cin, hidden), jnp.float32),
        b_stem=s * jax.random.normal(ks[1], (hidden,), jnp.float32),
        w1=s * jax.random.normal(ks[2], (k, hidden, hidden), jnp.float32),
        b1=s * jax.random.normal(ks[3], (hidden,), jnp.float32),
        w2=s * jax.random.normal(ks[4], (k, hidden, hidden), jnp.float32),
        b2=s * jax.random.normal(ks[5], (hidden,), jnp.float32),
        w_fc=s * jax.random.normal(ks[6], (hidden, out_dim), jnp.float32),
        b_fc=s * jax.random.normal(ks[7], (out_dim,), jnp.float32),
    )


def init_moe(key, cin, hidden, k, num_classes, num_experts=3):
    keys = jax.random.split(key, num_experts + 1)
    params = {"gate": init_resnet1d(keys[0], cin, hidden, k, num_experts)}
    for i in range(num_experts):
        params[f"expert{i}"] = init_resnet1d(keys[i + 1], cin, hidden, k, num_classes)
    return params


def pack_moe_params(params, num_experts=3, out_pad=128):
    """Stack gate + experts channel-wise so the fused kernel is lane-dense (128).

    Hidden conv weights are block-diagonal (75% zeros at hidden=32) — an
    accepted MXU-FLOP tradeoff that keeps N lane-dense; revisit if hidden grows.
    """
    nets = [params["gate"]] + [params[f"expert{i}"] for i in range(num_experts)]
    K, cin, hidden = nets[0]["w_stem"].shape
    n = len(nets)
    H = n * hidden
    assert max(int(p["w_fc"].shape[1]) for p in nets) <= hidden
    assert (n - 1) * hidden + int(nets[-1]["w_fc"].shape[1]) <= out_pad

    ws = jnp.concatenate([p["w_stem"] for p in nets], axis=-1).reshape(K * cin, H)
    bs = jnp.concatenate([p["b_stem"] for p in nets])[None, :]

    def block_diag(wk, bk):
        W = jnp.zeros((K, H, H), jnp.float32)
        for i, p in enumerate(nets):
            W = W.at[:, i * hidden:(i + 1) * hidden,
                     i * hidden:(i + 1) * hidden].set(p[wk])
        return W, jnp.concatenate([p[bk] for p in nets])[None, :]

    w1, b1 = block_diag("w1", "b1")
    w2, b2 = block_diag("w2", "b2")

    wfc = jnp.zeros((H, out_pad), jnp.float32)
    bfc = jnp.zeros((1, out_pad), jnp.float32)
    for i, p in enumerate(nets):
        od = int(p["w_fc"].shape[1])
        wfc = wfc.at[i * hidden:(i + 1) * hidden,
                     i * hidden:i * hidden + od].set(p["w_fc"])
        bfc = bfc.at[0, i * hidden:i * hidden + od].set(p["b_fc"])

    bf16 = lambda a: a.astype(jnp.bfloat16)     # MXU inputs; accumulation stays f32
    return dict(ws=bf16(ws), bs=bs, w1=bf16(w1), b1=b1, w2=bf16(w2), b2=b2,
                wfc=bf16(wfc), bfc=bfc)


# ---------------------------------------------------------------------------
if __name__ == "__main__":
    B, CIN, L = 4, 4, 16                  # PyTorch Conv1d layout: (N, C, L)
    HIDDEN, KSIZE, NUM_CLASSES, NUM_EXPERTS = 32, 3, 5, 3

    root = jax.random.PRNGKey(0)
    k_x, k_p = jax.random.split(root)
    x = jax.random.normal(k_x, (B, CIN, L), jnp.float32)
    params = init_moe(k_p, CIN, HIDDEN, KSIZE, NUM_CLASSES, NUM_EXPERTS)
    packed = pack_moe_params(params, NUM_EXPERTS)

    # b_tile=2 -> 2-step "parallel" pipelined grid even at this toy batch.
    fwd = jax.jit(functools.partial(moe_forward, num_classes=NUM_CLASSES,
                                    num_experts=NUM_EXPERTS, b_tile=2))
    out = jax.block_until_ready(fwd(x, packed))
    assert out.shape == (B, NUM_CLASSES) and out.dtype == jnp.float32
    assert bool(jnp.all(jnp.isfinite(out)))
    print("KERNEL_OK")
</pallas_src>

<mosaic_0001>
module attributes {stable_mosaic.version = 11 : i64} {
  func.func @_moe_fused_kernel(%arg0: i32, %arg1: memref<2x16x12xbf16, #tpu.memory_space<vmem>>, %arg2: memref<12x128xbf16, #tpu.memory_space<vmem>>, %arg3: memref<1x128xf32, #tpu.memory_space<vmem>>, %arg4: memref<3x128x128xbf16, #tpu.memory_space<vmem>>, %arg5: memref<1x128xf32, #tpu.memory_space<vmem>>, %arg6: memref<3x128x128xbf16, #tpu.memory_space<vmem>>, %arg7: memref<1x128xf32, #tpu.memory_space<vmem>>, %arg8: memref<128x128xbf16, #tpu.memory_space<vmem>>, %arg9: memref<1x128xf32, #tpu.memory_space<vmem>>, %arg10: memref<1x2x128xf32, #tpu.memory_space<vmem>>, %arg11: memref<2x18x128xf32, #tpu.memory_space<vmem>>) attributes {dimension_semantics = [#tpu.dimension_semantics<parallel>], iteration_bounds = array<i64: 2>, scalar_prefetch = 0 : i64, scratch_operands = 1 : i64, tpu.core_type = #tpu.core_type<tc>, window_params = [{transform_indices = @transform_0, window_bounds = array<i64: 2, 16, 12>}, {pipeline_mode = #tpu.pipeline_mode<synchronous>, transform_indices = @transform_1, window_bounds = array<i64: 12, 128>}, {pipeline_mode = #tpu.pipeline_mode<synchronous>, transform_indices = @transform_2, window_bounds = array<i64: 1, 128>}, {pipeline_mode = #tpu.pipeline_mode<synchronous>, transform_indices = @transform_3, window_bounds = array<i64: 3, 128, 128>}, {pipeline_mode = #tpu.pipeline_mode<synchronous>, transform_indices = @transform_4, window_bounds = array<i64: 1, 128>}, {pipeline_mode = #tpu.pipeline_mode<synchronous>, transform_indices = @transform_5, window_bounds = array<i64: 3, 128, 128>}, {pipeline_mode = #tpu.pipeline_mode<synchronous>, transform_indices = @transform_6, window_bounds = array<i64: 1, 128>}, {pipeline_mode = #tpu.pipeline_mode<synchronous>, transform_indices = @transform_7, window_bounds = array<i64: 128, 128>}, {pipeline_mode = #tpu.pipeline_mode<synchronous>, transform_indices = @transform_8, window_bounds = array<i64: 1, 128>}, {transform_indices = @transform_9, window_bounds = array<i64: 1, 2, 128>}]} {
    %cst = arith.constant 0.000000e+00 : f32
    %0 = vector.broadcast %cst : f32 to vector<2x1x128xf32>
    %c0 = arith.constant 0 : index
    %c0_0 = arith.constant 0 : index
    %c0_1 = arith.constant 0 : index
    %1 = vector.load %arg11[%c0, %c0_0, %c0_1] : memref<2x18x128xf32, #tpu.memory_space<vmem>>, vector<2x1x128xf32>
    tpu.vector_store %arg11[%c0, %c0_0, %c0_1], %0 {strides = array<i32>} : memref<2x18x128xf32, #tpu.memory_space<vmem>>, vector<2x1x128xf32>,
    %c0_2 = arith.constant 0 : index
    %c17 = arith.constant 17 : index
    %c0_3 = arith.constant 0 : index
    %2 = vector.load %arg11[%c0_2, %c17, %c0_3] : memref<2x18x128xf32, #tpu.memory_space<vmem>>, vector<2x1x128xf32>
    tpu.vector_store %arg11[%c0_2, %c17, %c0_3], %0 {strides = array<i32>} : memref<2x18x128xf32, #tpu.memory_space<vmem>>, vector<2x1x128xf32>,
    %c0_4 = arith.constant 0 : index
    %c0_5 = arith.constant 0 : index
    %c0_6 = arith.constant 0 : index
    %3 = vector.load %arg1[%c0_4, %c0_5, %c0_6] : memref<2x16x12xbf16, #tpu.memory_space<vmem>>, vector<2x16x12xbf16>
    %4 = vector.shape_cast %3 : vector<2x16x12xbf16> to vector<32x12xbf16>
    %c0_7 = arith.constant 0 : index
    %c0_8 = arith.constant 0 : index
    %5 = vector.load %arg2[%c0_7, %c0_8] : memref<12x128xbf16, #tpu.memory_space<vmem>>, vector<12x128xbf16>
    %cst_9 = arith.constant dense<0.000000e+00> : vector<32x128xf32>
    %6 = tpu.matmul %4, %5, %cst_9 {dimension_numbers = #tpu.dot_dimension_numbers<[1], [0], [0], [1], [0, 0, 1, 1], [], []>} : vector<32x12xbf16>, vector<12x128xbf16>, vector<32x128xf32> -> vector<32x128xf32>
    %c0_10 = arith.constant 0 : index
    %c0_11 = arith.constant 0 : index
    %7 = vector.load %arg3[%c0_10, %c0_11] : memref<1x128xf32, #tpu.memory_space<vmem>>, vector<1x128xf32>
    %8 = vector.broadcast %7 : vector<1x128xf32> to vector<32x128xf32>
    %9 = arith.addf %6, %8 : vector<32x128xf32>
    %cst_12 = arith.constant 0.000000e+00 : f32
    %10 = vector.broadcast %cst_12 : f32 to vector<32x128xf32>
    %11 = arith.maximumf %9, %10 : vector<32x128xf32>
    %12 = vector.shape_cast %11 : vector<32x128xf32> to vector<2x16x128xf32>
    %c0_13 = arith.constant 0 : index
    %c1 = arith.constant 1 : index
    %c0_14 = arith.constant 0 : index
    %13 = vector.load %arg11[%c0_13, %c1, %c0_14] : memref<2x18x128xf32, #tpu.memory_space<vmem>>, vector<2x16x128xf32>
    tpu.vector_store %arg11[%c0_13, %c1, %c0_14], %12 {strides = array<i32>} : memref<2x18x128xf32, #tpu.memory_space<vmem>>, vector<2x16x128xf32>,
    %c0_15 = arith.constant 0 : index
    %c0_16 = arith.constant 0 : index
    %c0_17 = arith.constant 0 : index
    %14 = vector.load %arg11[%c0_15, %c0_16, %c0_17] : memref<2x18x128xf32, #tpu.memory_space<vmem>>, vector<2x16x128xf32>
    %15 = vector.shape_cast %14 : vector<2x16x128xf32> to vector<32x128xf32>
    %16 = arith.truncf %15 : vector<32x128xf32> to vector<32x128xbf16>
    %c0_18 = arith.constant 0 : index
    %c0_19 = arith.constant 0 : index
    %c0_20 = arith.constant 0 : index
    %17 = vector.load %arg4[%c0_18, %c0_19, %c0_20] : memref<3x128x128xbf16, #tpu.memory_space<vmem>>, vector<1x128x128xbf16>
    %18 = vector.shape_cast %17 : vector<1x128x128xbf16> to vector<128x128xbf16>
    %cst_21 = arith.constant dense<0.000000e+00> : vector<32x128xf32>
    %19 = tpu.matmul %16, %18, %cst_21 {dimension_numbers = #tpu.dot_dimension_numbers<[1], [0], [0], [1], [0, 0, 1, 1], [], []>} : vector<32x128xbf16>, vector<128x128xbf16>, vector<32x128xf32> -> vector<32x128xf32>
    %c0_22 = arith.constant 0 : index
    %c1_23 = arith.constant 1 : index
    %c0_24 = arith.constant 0 : index
    %20 = vector.load %arg11[%c0_22, %c1_23, %c0_24] : memref<2x18x128xf32, #tpu.memory_space<vmem>>, vector<2x16x128xf32>
    %21 = vector.shape_cast %20 : vector<2x16x128xf32> to vector<32x128xf32>
    %22 = arith.truncf %21 : vector<32x128xf32> to vector<32x128xbf16>
    %c1_25 = arith.constant 1 : index
    %c0_26 = arith.constant 0 : index
    %c0_27 = arith.constant 0 : index
    %23 = vector.load %arg4[%c1_25, %c0_26, %c0_27] : memref<3x128x128xbf16, #tpu.memory_space<vmem>>, vector<1x128x128xbf16>
    %24 = vector.shape_cast %23 : vector<1x128x128xbf16> to vector<128x128xbf16>
    %cst_28 = arith.constant dense<0.000000e+00> : vector<32x128xf32>
    %25 = tpu.matmul %22, %24, %cst_28 {dimension_numbers = #tpu.dot_dimension_numbers<[1], [0], [0], [1], [0, 0, 1, 1], [], []>} : vector<32x128xbf16>, vector<128x128xbf16>, vector<32x128xf32> -> vector<32x128xf32>
    %26 = arith.addf %19, %25 : vector<32x128xf32>
    %c0_29 = arith.constant 0 : index
    %c2 = arith.constant 2 : index
    %c0_30 = arith.constant 0 : index
    %27 = vector.load %arg11[%c0_29, %c2, %c0_30] : memref<2x18x128xf32, #tpu.memory_space<vmem>>, vector<2x16x128xf32>
    %28 = vector.shape_cast %27 : vector<2x16x128xf32> to vector<32x128xf32>
    %29 = arith.truncf %28 : vector<32x128xf32> to vector<32x128xbf16>
    %c2_31 = arith.constant 2 : index
    %c0_32 = arith.constant 0 : index
    %c0_33 = arith.constant 0 : index
    %30 = vector.load %arg4[%c2_31, %c0_32, %c0_33] : memref<3x128x128xbf16, #tpu.memory_space<vmem>>, vector<1x128x128xbf16>
    %31 = vector.shape_cast %30 : vector<1x128x128xbf16> to vector<128x128xbf16>
    %cst_34 = arith.constant dense<0.000000e+00> : vector<32x128xf32>
    %32 = tpu.matmul %29, %31, %cst_34 {dimension_numbers = #tpu.dot_dimension_numbers<[1], [0], [0], [1], [0, 0, 1, 1], [], []>} : vector<32x128xbf16>, vector<128x128xbf16>, vector<32x128xf32> -> vector<32x128xf32>
    %33 = arith.addf %26, %32 : vector<32x128xf32>
    %c0_35 = arith.constant 0 : index
    %c0_36 = arith.constant 0 : index
    %34 = vector.load %arg5[%c0_35, %c0_36] : memref<1x128xf32, #tpu.memory_space<vmem>>, vector<1x128xf32>
    %35 = vector.broadcast %34 : vector<1x128xf32> to vector<32x128xf32>
    %36 = arith.addf %33, %35 : vector<32x128xf32>
    %37 = vector.shape_cast %36 : vector<32x128xf32> to vector<2x16x128xf32>
    %cst_37 = arith.constant 0.000000e+00 : f32
    %38 = vector.broadcast %cst_37 : f32 to vector<2x16x128xf32>
    %39 = arith.maximumf %37, %38 : vector<2x16x128xf32>
    %c0_38 = arith.constant 0 : index
    %c1_39 = arith.constant 1 : index
    %c0_40 = arith.constant 0 : index
    %40 = vector.load %arg11[%c0_38, %c1_39, %c0_40] : memref<2x18x128xf32, #tpu.memory_space<vmem>>, vector<2x16x128xf32>
    tpu.vector_store %arg11[%c0_38, %c1_39, %c0_40], %39 {strides = array<i32>} : memref<2x18x128xf32, #tpu.memory_space<vmem>>, vector<2x16x128xf32>,
    %c0_41 = arith.constant 0 : index
    %c0_42 = arith.constant 0 : index
    %c0_43 = arith.constant 0 : index
    %41 = vector.load %arg11[%c0_41, %c0_42, %c0_43] : memref<2x18x128xf32, #tpu.memory_space<vmem>>, vector<2x16x128xf32>
    %42 = vector.shape_cast %41 : vector<2x16x128xf32> to vector<32x128xf32>
    %43 = arith.truncf %42 : vector<32x128xf32> to vector<32x128xbf16>
    %c0_44 = arith.constant 0 : index
    %c0_45 = arith.constant 0 : index
    %c0_46 = arith.constant 0 : index
    %44 = vector.load %arg6[%c0_44, %c0_45, %c0_46] : memref<3x128x128xbf16, #tpu.memory_space<vmem>>, vector<1x128x128xbf16>
    %45 = vector.shape_cast %44 : vector<1x128x128xbf16> to vector<128x128xbf16>
    %cst_47 = arith.constant dense<0.000000e+00> : vector<32x128xf32>
    %46 = tpu.matmul %43, %45, %cst_47 {dimension_numbers = #tpu.dot_dimension_numbers<[1], [0], [0], [1], [0, 0, 1, 1], [], []>} : vector<32x128xbf16>, vector<128x128xbf16>, vector<32x128xf32> -> vector<32x128xf32>
    %c0_48 = arith.constant 0 : index
    %c1_49 = arith.constant 1 : index
    %c0_50 = arith.constant 0 : index
    %47 = vector.load %arg11[%c0_48, %c1_49, %c0_50] : memref<2x18x128xf32, #tpu.memory_space<vmem>>, vector<2x16x128xf32>
    %48 = vector.shape_cast %47 : vector<2x16x128xf32> to vector<32x128xf32>
    %49 = arith.truncf %48 : vector<32x128xf32> to vector<32x128xbf16>
    %c1_51 = arith.constant 1 : index
    %c0_52 = arith.constant 0 : index
    %c0_53 = arith.constant 0 : index
    %50 = vector.load %arg6[%c1_51, %c0_52, %c0_53] : memref<3x128x128xbf16, #tpu.memory_space<vmem>>, vector<1x128x128xbf16>
    %51 = vector.shape_cast %50 : vector<1x128x128xbf16> to vector<128x128xbf16>
    %cst_54 = arith.constant dense<0.000000e+00> : vector<32x128xf32>
    %52 = tpu.matmul %49, %51, %cst_54 {dimension_numbers = #tpu.dot_dimension_numbers<[1], [0], [0], [1], [0, 0, 1, 1], [], []>} : vector<32x128xbf16>, vector<128x128xbf16>, vector<32x128xf32> -> vector<32x128xf32>
    %53 = arith.addf %46, %52 : vector<32x128xf32>
    %c0_55 = arith.constant 0 : index
    %c2_56 = arith.constant 2 : index
    %c0_57 = arith.constant 0 : index
    %54 = vector.load %arg11[%c0_55, %c2_56, %c0_57] : memref<2x18x128xf32, #tpu.memory_space<vmem>>, vector<2x16x128xf32>
    %55 = vector.shape_cast %54 : vector<2x16x128xf32> to vector<32x128xf32>
    %56 = arith.truncf %55 : vector<32x128xf32> to vector<32x128xbf16>
    %c2_58 = arith.constant 2 : index
    %c0_59 = arith.constant 0 : index
    %c0_60 = arith.constant 0 : index
    %57 = vector.load %arg6[%c2_58, %c0_59, %c0_60] : memref<3x128x128xbf16, #tpu.memory_space<vmem>>, vector<1x128x128xbf16>
    %58 = vector.shape_cast %57 : vector<1x128x128xbf16> to vector<128x128xbf16>
    %cst_61 = arith.constant dense<0.000000e+00> : vector<32x128xf32>
    %59 = tpu.matmul %56, %58, %cst_61 {dimension_numbers = #tpu.dot_dimension_numbers<[1], [0], [0], [1], [0, 0, 1, 1], [], []>} : vector<32x128xbf16>, vector<128x128xbf16>, vector<32x128xf32> -> vector<32x128xf32>
    %60 = arith.addf %53, %59 : vector<32x128xf32>
    %c0_62 = arith.constant 0 : index
    %c0_63 = arith.constant 0 : index
    %61 = vector.load %arg7[%c0_62, %c0_63] : memref<1x128xf32, #tpu.memory_space<vmem>>, vector<1x128xf32>
    %62 = vector.broadcast %61 : vector<1x128xf32> to vector<32x128xf32>
    %63 = arith.addf %60, %62 : vector<32x128xf32>
    %64 = vector.shape_cast %63 : vector<32x128xf32> to vector<2x16x128xf32>
    %65 = arith.addf %64, %12 : vector<2x16x128xf32>
    %cst_64 = arith.constant 0.000000e+00 : f32
    %66 = vector.broadcast %cst_64 : f32 to vector<2x16x128xf32>
    %67 = arith.maximumf %65, %66 : vector<2x16x128xf32>
    %cst_65 = arith.constant dense<0.000000e+00> : vector<2x128xf32>
    %68 = vector.multi_reduction <add>, %67, %cst_65 [1] : vector<2x16x128xf32> to vector<2x128xf32>
    %cst_66 = arith.constant 6.250000e-02 : f32
    %69 = vector.broadcast %cst_66 : f32 to vector<2x128xf32>
    %70 = arith.mulf %68, %69 : vector<2x128xf32>
    %71 = arith.truncf %70 : vector<2x128xf32> to vector<2x128xbf16>
    %c0_67 = arith.constant 0 : index
    %c0_68 = arith.constant 0 : index
    %72 = vector.load %arg8[%c0_67, %c0_68] : memref<128x128xbf16, #tpu.memory_space<vmem>>, vector<128x128xbf16>
    %cst_69 = arith.constant dense<0.000000e+00> : vector<2x128xf32>
    %73 = tpu.matmul %71, %72, %cst_69 {dimension_numbers = #tpu.dot_dimension_numbers<[1], [0], [0], [1], [0, 0, 1, 1], [], []>} : vector<2x128xbf16>, vector<128x128xbf16>, vector<2x128xf32> -> vector<2x128xf32>
    %c0_70 = arith.constant 0 : index
    %c0_71 = arith.constant 0 : index
    %74 = vector.load %arg9[%c0_70, %c0_71] : memref<1x128xf32, #tpu.memory_space<vmem>>, vector<1x128xf32>
    %75 = vector.broadcast %74 : vector<1x128xf32> to vector<2x128xf32>
    %76 = arith.addf %73, %75 : vector<2x128xf32>
    %77 = vector.extract_strided_slice %76 {offsets = [0, 0], sizes = [2, 3], strides = [1, 1]} : vector<2x128xf32> to vector<2x3xf32>
    %78 = arith.negf %77 : vector<2x3xf32>
    %79 = math.exp %78 : vector<2x3xf32>
    %cst_72 = arith.constant 1.000000e+00 : f32
    %80 = vector.broadcast %cst_72 : f32 to vector<2x3xf32>
    %81 = arith.addf %80, %79 : vector<2x3xf32>
    %82 = arith.divf %80, %81 : vector<2x3xf32>
    %cst_73 = arith.constant 0.000000e+00 : f32
    %83 = vector.broadcast %cst_73 : f32 to vector<2x5xf32>
    %84 = vector.extract_strided_slice %82 {offsets = [0, 0], sizes = [2, 1], strides = [1, 1]} : vector<2x3xf32> to vector<2x1xf32>
    %85 = vector.extract_strided_slice %76 {offsets = [0, 32], sizes = [2, 5], strides = [1, 1]} : vector<2x128xf32> to vector<2x5xf32>
    %86 = vector.broadcast %84 : vector<2x1xf32> to vector<2x5xf32>
    %87 = arith.mulf %86, %85 : vector<2x5xf32>
    %88 = arith.addf %83, %87 : vector<2x5xf32>
    %89 = vector.extract_strided_slice %82 {offsets = [0, 1], sizes = [2, 1], strides = [1, 1]} : vector<2x3xf32> to vector<2x1xf32>
    %90 = vector.extract_strided_slice %76 {offsets = [0, 64], sizes = [2, 5], strides = [1, 1]} : vector<2x128xf32> to vector<2x5xf32>
    %91 = vector.broadcast %89 : vector<2x1xf32> to vector<2x5xf32>
    %92 = arith.mulf %91, %90 : vector<2x5xf32>
    %93 = arith.addf %88, %92 : vector<2x5xf32>
    %94 = vector.extract_strided_slice %82 {offsets = [0, 2], sizes = [2, 1], strides = [1, 1]} : vector<2x3xf32> to vector<2x1xf32>
    %95 = vector.extract_strided_slice %76 {offsets = [0, 96], sizes = [2, 5], strides = [1, 1]} : vector<2x128xf32> to vector<2x5xf32>
    %96 = vector.broadcast %94 : vector<2x1xf32> to vector<2x5xf32>
    %97 = arith.mulf %96, %95 : vector<2x5xf32>
    %98 = arith.addf %93, %97 : vector<2x5xf32>
    %cst_74 = arith.constant 0.000000e+00 : f32
    %99 = vector.broadcast %cst_74 : f32 to vector<2x123xf32>
    %100 = tpu.concatenate %98, %99 in 1 : vector<2x5xf32>, vector<2x123xf32> -> vector<2x128xf32>
    %101 = vector.shape_cast %100 : vector<2x128xf32> to vector<1x2x128xf32>
    %c0_75 = arith.constant 0 : index
    %c0_76 = arith.constant 0 : index
    %c0_77 = arith.constant 0 : index
    %102 = vector.load %arg10[%c0_75, %c0_76, %c0_77] : memref<1x2x128xf32, #tpu.memory_space<vmem>>, vector<1x2x128xf32>
    tpu.vector_store %arg10[%c0_75, %c0_76, %c0_77], %101 {strides = array<i32>} : memref<1x2x128xf32, #tpu.memory_space<vmem>>, vector<1x2x128xf32>,
    return
  }
  func.func @transform_0(%arg0: i32) -> (i32, i32, i32) {
    %c0_i32 = arith.constant 0 : i32
    %c0_i32_0 = arith.constant 0 : i32
    %c0_i32_1 = arith.constant 0 : i32
    return %arg0, %c0_i32, %c0_i32_0 : i32, i32, i32
  }
  func.func @transform_1(%arg0: i32) -> (i32, i32) {
    %c0_i32 = arith.constant 0 : i32
    %c0_i32_0 = arith.constant 0 : i32
    %c0_i32_1 = arith.constant 0 : i32
    return %c0_i32, %c0_i32_0 : i32, i32
  }
  func.func @transform_2(%arg0: i32) -> (i32, i32) {
    %c0_i32 = arith.constant 0 : i32
    %c0_i32_0 = arith.constant 0 : i32
    %c0_i32_1 = arith.constant 0 : i32
    return %c0_i32, %c0_i32_0 : i32, i32
  }
  func.func @transform_3(%arg0: i32) -> (i32, i32, i32) {
    %c0_i32 = arith.constant 0 : i32
    %c0_i32_0 = arith.constant 0 : i32
    %c0_i32_1 = arith.constant 0 : i32
    %c0_i32_2 = arith.constant 0 : i32
    return %c0_i32, %c0_i32_0, %c0_i32_1 : i32, i32, i32
  }
  func.func @transform_4(%arg0: i32) -> (i32, i32) {
    %c0_i32 = arith.constant 0 : i32
    %c0_i32_0 = arith.constant 0 : i32
    %c0_i32_1 = arith.constant 0 : i32
    return %c0_i32, %c0_i32_0 : i32, i32
  }
  func.func @transform_5(%arg0: i32) -> (i32, i32, i32) {
    %c0_i32 = arith.constant 0 : i32
    %c0_i32_0 = arith.constant 0 : i32
    %c0_i32_1 = arith.constant 0 : i32
    %c0_i32_2 = arith.constant 0 : i32
    return %c0_i32, %c0_i32_0, %c0_i32_1 : i32, i32, i32
  }
  func.func @transform_6(%arg0: i32) -> (i32, i32) {
    %c0_i32 = arith.constant 0 : i32
    %c0_i32_0 = arith.constant 0 : i32
    %c0_i32_1 = arith.constant 0 : i32
    return %c0_i32, %c0_i32_0 : i32, i32
  }
  func.func @transform_7(%arg0: i32) -> (i32, i32) {
    %c0_i32 = arith.constant 0 : i32
    %c0_i32_0 = arith.constant 0 : i32
    %c0_i32_1 = arith.constant 0 : i32
    return %c0_i32, %c0_i32_0 : i32, i32
  }
  func.func @transform_8(%arg0: i32) -> (i32, i32) {
    %c0_i32 = arith.constant 0 : i32
    %c0_i32_0 = arith.constant 0 : i32
    %c0_i32_1 = arith.constant 0 : i32
    return %c0_i32, %c0_i32_0 : i32, i32
  }
  func.func @transform_9(%arg0: i32) -> (i32, i32, i32) {
    %c0_i32 = arith.constant 0 : i32
    %c0_i32_0 = arith.constant 0 : i32
    %c0_i32_1 = arith.constant 0 : i32
    return %arg0, %c0_i32, %c0_i32_0 : i32, i32, i32
  }
}

</mosaic_0001>

<bundles_post_ra>
// kernel: moe_forward.1
= control target key start
LH: loop header
LB: loop body
LE: loop exit
PB: predicated region body
PF: predicated region fallthrough
CT: control target
= control target key end

     0   :  { %14 = vsyncpa [#allocation4], 0  ;;  %s2466_s0 = inlined_call_operand.vmem [shape: bf16[4,16,12], index: 0, kind: input, shape index: {}]   ;;  %s2467_s1 = inlined_call_operand.vmem [shape: bf16[12,128], index: 1, kind: input, shape index: {}]   ;;  %s2468_s2 = inlined_call_operand.vmem [shape: f32[1,128], index: 2, kind: input, shape index: {}]   ;;  %s2469_s3 = inlined_call_operand.vmem [shape: bf16[3,128,128], index: 3, kind: input, shape index: {}]   ;;  %s2470_s4 = inlined_call_operand.vmem [shape: f32[1,128], index: 4, kind: input, shape index: {}]   ;;  %s2471_s5 = inlined_call_operand.vmem [shape: bf16[3,128,128], index: 5, kind: input, shape index: {}]   ;;  %s2472_s6 = inlined_call_operand.vmem [shape: f32[1,128], index: 6, kind: input, shape index: {}]   ;;  %s2473_s7 = inlined_call_operand.hbm [shape: bf16[128,128], index: 7, kind: input, shape index: {}]   ;;  %s2474_s8 = inlined_call_operand.vmem [shape: f32[1,128], index: 8, kind: input, shape index: {}]   ;;  %s2475_s9 = inlined_call_operand.hbm [shape: f32[2,2,128], index: 9, kind: output, shape index: {}]  }
   0x1   :  { %15 = vsyncpa [#allocation5], 0 }
   0x2   :  { %17 = vsyncpa [#allocation5 + $0x1], 0  ;;  %s2140_s30 = smov 0   ;;  %s2142_s10 = smov 0  }
   0x3   :  { %s2144_s11 = smov 0   ;;  %s2146_s12 = smov 0  }
   0x4 LB: > { %s2161_s13 = sadd.s32 4294967295, %s2077_s12   ;;  %s1478_s14 = sadd.s32 4294967294, %s2077_s12   ;;  %s2077_s12 = sphi %s2146_s12, %s2491_s12   ;;  %s2073_s11 = sphi %s2144_s11, %s2490_s11   ;;  %s2069_s10 = sphi %s2142_s10, %s2489_s10   ;;  %s2065_s30 = sphi %s2140_s30, %s2488_s30  }
   0x5   : > { %s2165_s15 = sadd.s32 1, %s2077_s12   ;;  %s224_s16 = sadd.s32 1, %s2073_s11 }
   0x6   : > { %s221_s17 = ssub.s32 %s2077_s12, %s2165_s15  ;;  %p234_p0 = scmp.ne.s32.totalorder %s2073_s11, %s2069_s10 }
   0x7   : > { %p222_p1 = scmp.eq.s32.totalorder %s221_s17, 0  ;;  %p235_p2 = scmp.eq.s32.totalorder %s2161_s13, 1 }
   0x8   : > { %p240_p3 = scmp.ne.s32.totalorder %s2069_s10, %s2065_s30  ;;  %p241_p4 = scmp.eq.s32.totalorder %s1478_s14, 1 }
   0x9   : > { %s2176_s18 = scalar_select %p222_p1, %s2073_s11, %s224_s16  }
   0xa   : > { %p2178_p5 = por %p235_p2, %p234_p0  ;;  %p2182_p6 = por %p241_p4, %p240_p3 }
   0xb   : > { %p1479_p7 = scmp.ge.s32.totalorder %s2077_s12, 1  ;;  %p248_p8 = scmp.lt.s32.totalorder %s2077_s12, 3 }
   0xc   : > { %s2479_s19 = scalar_select %p2178_p5, 1, 0 }
   0xd   : > { %s2480_s20 = scalar_select %p2182_p6, 1, 0 }
   0xe   : > { %p2476_p9 = scmp.eq.s32.totalorder %s2161_s13, 0  ;;  %p2189_p10 = pnand %p1479_p7, %p248_p8 }
   0xf   : > { %s2079_s22 = smov [#allocation3]   ;;  %s1983_s27 = scalar_lea.hbm %s2473_s7, 1024 }
  0x10   : > { %s2481_s21 = scalar_select %p2189_p10, 1, 0 }
  0x11   : > { %s278_s23 = sshll.u32 %s2079_s22, 4  ;;  %p1864_p11 = pneg %p2189_p10  ;;  %s279_s23 = int_to_ptr.vmem [resolvable:$true] %s278_s23 }
  0x12   : > { %p1984_p13 = scmp.ne.s32.totalorder %s2473_s7, %s1983_s27  ;;  %p1990_p3 = scmp.lt.u32.totalorder %s1983_s27, %s2473_s7 }
  0x13   : > { %p2197_p12 = pnand %p2476_p9, %p1864_p11 }
  0x15   : > { %p1985_p0 = pneg %p2197_p12 }
  0x17   : > { %p1986_p1 = pnand %p1985_p0, %p1984_p13 }
  0x19   : > { %p1987_p2 = pneg %p1986_p1 }
  0x1b   : > { %p1992_p4 = pnand %p1990_p3, %p1987_p2 }
  0x1d   : > { %1995 = shalt.err (!%p1992_p4)
}
  0x1e   : > { %s1996_s17 = scalar_lea.vmem %s279_s23, 1024  ;;  %p2004_p9 = scmp.lt.s32.totalorder %s279_s23, %s279_s23 }
  0x1f   : > { %p1997_p7 = scmp.ne.s32.totalorder %s279_s23, %s1996_s17  ;;  %p2005_p6 = scmp.lt.s32.totalorder %s1996_s17, %s1996_s17 }
  0x21   : > { %p1999_p8 = pnand %p1997_p7, %p1985_p0  ;;  %p2006_p5 = por %p2005_p6, %p2004_p9 }
  0x23   : > { %p2000_p11 = pneg %p1999_p8 }
  0x25   : > { %p2007_p10 = pnand %p2006_p5, %p2000_p11 }
  0x27   : > { %2010 = shalt.err (!%p2007_p10)
}
  0x28   : > { %s2080_s22 = smov 64   ;;  %s2081_s25 = smov 4  }
  0x29   : > { %1867 = dma.hbm_to_vmem [thread:$0]  (!%p2197_p12), %s2473_s7, 1024, %s279_s23, [#allocation4], %s2080_s22, %s2080_s22, %s2081_s25  }
  0x2a   : > { %p2483_p13 = scmp.ne.s32.totalorder %s2481_s21, 0 }
  0x2b   : > { %p2484_p1 = scmp.eq.s32.totalorder (!%p2483_p13), %s2161_s13, 0 }
  0x2c   : > { %307 = sbr.rel (%p2483_p13) target bundleno = 1498 (0x5da), region = 56 }
  0x33   : > { %2056 = dma.done.wait (%p2484_p1), [#allocation4], 1024   ;;  %p2485_p0 = pmov %p2484_p1 }
  0x34   : > { %s1485_s27 = sshll.u32 %s2161_s13, 1  ;;  %vm391_vm0 = vcmask 1045504   ;;  %vm384_vm1 = vcmask 97280   ;;  %v1920_v0 = vld [vmem:[%s2467_s1] sm:$0x3f]   ;;  %v1924_v5 = vld [vmem:[%s2469_s3 + $0x48] sm:$0xff]  }
  0x35   : > { %2058 = vsyncadd (%p2485_p0), [#allocation4], 4294966272  ;;  %p345_p5 = scmp.lt.s32.totalorder %s1485_s27, 3  ;;  %1857 = vmatprep.subr.msk.bf16.mxu0 %vm391_vm0, %v1920_v0  ;;  %v393_v2 = vsel %vm391_vm0, %v1920_v0, 0  ;;  %v1923_v4 = vld [vmem:[%s2469_s3 + $0x40] sm:$0xff]   ;;  %v1925_v6 = vld [vmem:[%s2469_s3 + $0x50] sm:$0xff]  }
  0x36   : > { %1696 = vmatpush3.bf16.msra.mxu0 %v393_v2  ;;  %1701 = vmatprep.subr.bf16.mxu1 %v1923_v4  ;;  %v1926_v7 = vld [vmem:[%s2469_s3 + $0x58] sm:$0xff]   ;;  %v1927_v8 = vld [vmem:[%s2469_s3 + $0x60] sm:$0xff]   ;;  %v1928_v9 = vld [vmem:[%s2469_s3 + $0x68] sm:$0xff]   ;;  %v2082_v12 = vmov 0.0   ;;  %vm2083_vm2 = vmmov 0   ;;  %vm1261_vm3 = vcmask 1041409  }
  0x37   : > { %s2493_s27 = smov (!%p345_p5, %s1485_s27), 3  ;;  %1702 = vmatpush3.bf16.msra.mxu1 %v1923_v4  ;;  %v1929_v10 = vld [vmem:[%s2469_s3 + $0x70] sm:$0xff]   ;;  %v1930_v11 = vld [vmem:[%s2469_s3 + $0x78] sm:$0xff]   ;;  %352 = vst [vmem:[#allocation2] sm:$0x1] %v2082_v12  ;;  %v1931_v13 = vld [vmem:[%s2469_s3] sm:$0xff]  }
  0x38   : > { %s1622_s29 = sshll.u32 %s2493_s27, 3  ;;  %1703 = vmatprep.subr.bf16.mxu1 %v1924_v5  ;;  %353 = vst [vmem:[#allocation2 + $0x18] sm:$0x1] %v2082_v12  ;;  %354 = vst [vmem:[#allocation2 + $0x11] sm:$0x1] %v2082_v12  ;;  %v1947_v14 = vld [vmem:[%s2471_s5 + $0x40] sm:$0xff]  }
  0x39   : > { %s349_s16 = scalar_lea.vmem %s2466_s0, %s1622_s29  ;;  %355 = vst [vmem:[#allocation2 + $0x29] sm:$0x1] %v2082_v12  ;;  %v1948_v15 = vld [vmem:[%s2471_s5 + $0x48] sm:$0xff]   ;;  %1761 = vmatprep.subr.bf16.mxu0 %v1947_v14  ;;  %v1949_v16 = vld [vmem:[%s2471_s5 + $0x50] sm:$0xff]   ;;  %v1950_v17 = vld [vmem:[%s2471_s5 + $0x58] sm:$0xff]   ;;  %s2087_s14 = smov 96  }
  0x3a   : > { %v1921_v1 = vld [vmem:[%s349_s16] sm:$0xff]   ;;  %v1922_v3 = vld [vmem:[%s349_s16 + $0x8] sm:$0xff]   ;;  %v1933_v34 = vld [vmem:[%s2469_s3 + $0x10] sm:$0xff]   ;;  %s2088_s16 = smov 64   ;;  %s341_s23 = sand.u32 1, %s2069_s10   ;;  %vm1390_vm4 = vcmask 39936  }
  0x3b   : > { %1697 = vmatprep.mubr.msk.bf16.mxu0 %vm384_vm1, %v1921_v1  ;;  %1704 = vmatpush3.bf16.msra.mxu1 %v1924_v5  ;;  %v1488_v18 = vld [vmem:[%s2468_s2] ss:$0 sm:$0xff]  ;;  %v1932_v33 = vld [vmem:[%s2469_s3 + $0x8] sm:$0xff]   ;;  %v1934_v38 = vld [vmem:[%s2469_s3 + $0x18] sm:$0xff]   ;;  %s1484_s21 = sshll.u32 %s341_s23, 1  ;;  %s1619_s17 = sshll.u32 %s2161_s13, 5 }
  0x3c   : > { %1698 = vmatmul.mubr.msk.bf16.vlgmr.msra.gmra.mrb[0].mxu0 %vm384_vm1, %v1922_v3  ;;  %1705 = vmatprep.subr.bf16.mxu1 %v1925_v6  ;;  %v1935_v39 = vld [vmem:[%s2469_s3 + $0x20] sm:$0xff]   ;;  %v1936_v40 = vld [vmem:[%s2469_s3 + $0x28] sm:$0xff]   ;;  %v1937_v41 = vld [vmem:[%s2469_s3 + $0x30] sm:$0xff]   ;;  %s343_s22 = scalar_lea.vmem [#allocation6], %s1484_s21  ;;  %s2424_s27 = scalar_lea.hbm %s2475_s9, %s1619_s17 }
  0x3d   : > { %1762 = vmatpush3.bf16.msra.mxu0 %v1947_v14  ;;  %v1938_v42 = vld [vmem:[%s2469_s3 + $0x38] sm:$0xff]   ;;  %v1939_v43 = vld [vmem:[%s2469_s3 + $0x80] sm:$0xff]   ;;  %v1940_v49 = vld [vmem:[%s2469_s3 + $0x88] sm:$0xff]   ;;  %s1407_s25 = sshll.u32 %s343_s22, 4  ;;  %s1394_s29 = scalar_lea.sflag [#allocation5], %s341_s23  ;;  %s2426_s25 = int_to_ptr.vmem [resolvable:$true] %s1407_s25 }
  0x3e   : > { %1763 = vmatprep.subr.bf16.mxu0 %v1948_v15  ;;  %v1941_v51 = vld [vmem:[%s2469_s3 + $0x90] sm:$0xff]   ;;  %v1942_v52 = vld [vmem:[%s2469_s3 + $0x98] sm:$0xff]   ;;  %v1943_v53 = vld [vmem:[%s2469_s3 + $0xa0] sm:$0xff]   ;;  %s2011_s24 = scalar_lea.vmem %s2426_s25, 32  ;;  %p2486_p9 = scmp.ne.s32.totalorder %s2479_s19, 0 }
  0x3f   : > { %1706 = vmatpush3.bf16.msra.mxu1 %v1925_v6  ;;  %v1944_v54 = vld [vmem:[%s2469_s3 + $0xa8] sm:$0xff]   ;;  %v1945_v55 = vld [vmem:[%s2469_s3 + $0xb0] sm:$0xff]   ;;  %v1946_v56 = vld [vmem:[%s2469_s3 + $0xb8] sm:$0xff]   ;;  %p2012_p6 = scmp.ne.s32.totalorder %s2426_s25, %s2011_s24  ;;  %s2089_s13 = smov [#allocation6]  }
  0x40   : > { %1707 = vmatprep.subr.bf16.mxu1 %v1926_v7  ;;  %v1951_v60 = vld [vmem:[%s2471_s5 + $0x60] sm:$0xff]   ;;  %v1952_v61 = vld [vmem:[%s2471_s5 + $0x68] sm:$0xff]   ;;  %v1953_v62 = vld [vmem:[%s2471_s5 + $0x70] sm:$0xff]  }
  0x41   : > { %1764 = vmatpush3.bf16.msra.mxu0 %v1948_v15  ;;  %v1954_v63 = vld [vmem:[%s2471_s5 + $0x78] sm:$0xff]   ;;  %v1955_v0 = vld [vmem:[%s2471_s5] sm:$0xff]   ;;  %p2013_p10 = pnand %p2012_p6, %p2486_p9 }
  0x42   : > { %1765 = vmatprep.subr.bf16.mxu0 %v1949_v16  ;;  %v1550_v1 = vld [vmem:[%s2470_s4] ss:$0 sm:$0xff] }
  0x43   : > { %1708 = vmatpush3.bf16.msra.mxu1 %v1926_v7  ;;  %p2014_p12 = pneg %p2013_p10 }
  0x44   : > { %1709 = vmatprep.subr.bf16.mxu1 %v1927_v8 }
  0x45   : > { %1766 = vmatpush3.bf16.msra.mxu0 %v1949_v16 }
  0x46   : > { %1767 = vmatprep.subr.bf16.mxu0 %v1950_v17 }
  0x47   : > { %1710 = vmatpush3.bf16.msra.mxu1 %v1927_v8 }
  0x48   : > { %1711 = vmatprep.subr.bf16.mxu1 %v1928_v9 }
  0x49   : > { %1768 = vmatpush3.bf16.msra.mxu0 %v1950_v17  ;;  %v1956_v17 = vld [vmem:[%s2471_s5 + $0x8] sm:$0xff]  }
  0x4a   : > { %1769 = vmatprep.subr.bf16.mxu0 %v1951_v60 }
  0x4b   : > { %1712 = vmatpush3.bf16.msra.mxu1 %v1928_v9 }
  0x4c   : > { %1713 = vmatprep.subr.bf16.mxu1 %v1929_v10 }
  0x4d   : > { %1770 = vmatpush3.bf16.msra.mxu0 %v1951_v60 }
  0x4e   : > { %1771 = vmatprep.subr.bf16.mxu0 %v1952_v61 }
  0x4f   : > { %1714 = vmatpush3.bf16.msra.mxu1 %v1929_v10 }
  0x50   : > { %1715 = vmatprep.subr.bf16.mxu1 %v1930_v11 }
  0x51   : > { %1772 = vmatpush3.bf16.msra.mxu0 %v1952_v61 }
  0x52   : > { %1773 = vmatprep.subr.bf16.mxu0 %v1953_v62 }
  0x53   : > { %1716 = vmatpush3.bf16.msra.mxu1 %v1930_v11 }
  0x54   : > { %1721 = vmatprep.subr.bf16.mxu1 %v1931_v13 }
  0x55   : > { %1774 = vmatpush3.bf16.msra.mxu0 %v1953_v62 }
  0x56   : > { %1775 = vmatprep.subr.bf16.mxu0 %v1954_v63 }
  0x59   : > { %1776 = vmatpush3.bf16.msra.mxu0 %v1954_v63 }
  0x5a   : > { %1781 = vmatprep.subr.bf16.mxu0 %v1955_v0 }
 0x10f   : > { %v1699_v19 = vpop.f32.mrb[0].mxu0 }
 0x110   : > { %v438_v20 = vadd.f32 %v1699_v19, %v1488_v18  ;;  %v429_v21 = vpop.f32.mrb[1].mxu0 }
 0x111   : > { %v430_v22 = vadd.f32 %v1488_v18, %v429_v21  ;;  %v1700_v23 = vpop.f32.mrb[2].mxu0 }
 0x112   : > { %v2276_v24 = vmax.f32 %v438_v20, 0.0  ;;  %v441_v25 = vadd.f32 %v1700_v23, %v1488_v18  ;;  %v432_v26 = vpop.f32.mrb[3].mxu0  ;;  %v1959_v23 = vld [vmem:[%s2471_s5 + $0x20] sm:$0xff]  }
 0x113   : > { %v2278_v27 = vmax.f32 %v430_v22, 0.0  ;;  %v433_v28 = vadd.f32 %v1488_v18, %v432_v26  ;;  %v1957_v18 = vld [vmem:[%s2471_s5 + $0x10] sm:$0xff]   ;;  %v1958_v22 = vld [vmem:[%s2471_s5 + $0x18] sm:$0xff]  }
 0x114   : > { %450 = vst [vmem:[#allocation2 + $0x19] sm:$0xff] %v2276_v24  ;;  %v2281_v29 = vmax.f32 %v441_v25, 0.0  ;;  %v1960_v25 = vld [vmem:[%s2471_s5 + $0x28] sm:$0xff]   ;;  %v1961_v26 = vld [vmem:[%s2471_s5 + $0x30] sm:$0xff]  }
 0x115   : > { %448 = vst [vmem:[#allocation2 + $0x1] sm:$0xff] %v2278_v27  ;;  %v2284_v30 = vmax.f32 %v433_v28, 0.0  ;;  %v1962_v28 = vld [vmem:[%s2471_s5 + $0x38] sm:$0xff]  }
 0x116   : > { %451 = vst [vmem:[#allocation2 + $0x21] sm:$0xff] %v2281_v29  ;;  %v479_v32 = vpack.c.bf16 %v2281_v29, %v2276_v24 }
 0x117   : > { %449 = vst [vmem:[#allocation2 + $0x9] sm:$0xff] %v2284_v30  ;;  %v478_v31 = vpack.c.bf16 %v2284_v30, %v2278_v27 }
 0x119   : > { %1717 = vmatprep.mubr.bf16.mxu1 %v478_v31  ;;  %v1963_v31 = vld [vmem:[%s2471_s5 + $0x80] sm:$0xff]  }
 0x11a   : > { %1718 = vmatmul.mubr.bf16.vlgmr.msra.gmra.mrb[0].mxu1 %v479_v32 }
 0x11b   : > { %1722 = vmatpush3.bf16.msra.mxu1 %v1931_v13  ;;  %v454_v47 = vld [vmem:[#allocation2 + $0x18] sm:$0xff] }
 0x11c   : > { %1723 = vmatprep.subr.bf16.mxu1 %v1932_v33  ;;  %v452_v35 = vld [vmem:[#allocation2] sm:$0xff] }
 0x11d   : > { %v455_v44 = vld [vmem:[#allocation2 + $0x20] sm:$0xff] }
 0x11e   : > { %v453_v36 = vld [vmem:[#allocation2 + $0x8] sm:$0xff]  ;;  %v457_v48 = vpack.c.bf16 %v455_v44, %v454_v47  ;;  %v693_v57 = vld [vmem:[#allocation2 + $0x1a] sm:$0xff] }
 0x11f   : > { %v456_v37 = vpack.c.bf16 %v453_v36, %v452_v35  ;;  %1724 = vmatpush3.bf16.msra.mxu1 %v1932_v33  ;;  %v691_v45 = vld [vmem:[#allocation2 + $0x2] sm:$0xff]  ;;  %v692_v46 = vld [vmem:[#allocation2 + $0xa] sm:$0xff]  ;;  %v1970_v44 = vld [vmem:[%s2471_s5 + $0xb8] sm:$0xff]  }
 0x120   : > { %1725 = vmatprep.subr.bf16.mxu1 %v1933_v34  ;;  %v695_v50 = vpack.c.bf16 %v692_v46, %v691_v45  ;;  %v694_v58 = vld [vmem:[#allocation2 + $0x22] sm:$0xff] }
 0x121   : > { %1737 = vmatprep.mubr.bf16.mxu1 %v456_v37  ;;  %v696_v59 = vpack.c.bf16 %v694_v58, %v693_v57  ;;  %v1964_v37 = vld [vmem:[%s2471_s5 + $0x88] sm:$0xff]  }
 0x123   : > { %1726 = vmatpush3.bf16.msra.mxu1 %v1933_v34 }
 0x124   : > { %1727 = vmatprep.subr.bf16.mxu1 %v1934_v38 }
 0x127   : > { %1728 = vmatpush3.bf16.msra.mxu1 %v1934_v38 }
 0x128   : > { %1729 = vmatprep.subr.bf16.mxu1 %v1935_v39 }
 0x12b   : > { %1730 = vmatpush3.bf16.msra.mxu1 %v1935_v39  ;;  %v1965_v39 = vld [vmem:[%s2471_s5 + $0x90] sm:$0xff]  }
 0x12c   : > { %1731 = vmatprep.subr.bf16.mxu1 %v1936_v40 }
 0x12f   : > { %1732 = vmatpush3.bf16.msra.mxu1 %v1936_v40  ;;  %v1966_v40 = vld [vmem:[%s2471_s5 + $0x98] sm:$0xff]  }
 0x130   : > { %1733 = vmatprep.subr.bf16.mxu1 %v1937_v41 }
 0x133   : > { %1734 = vmatpush3.bf16.msra.mxu1 %v1937_v41  ;;  %v1967_v41 = vld [vmem:[%s2471_s5 + $0xa0] sm:$0xff]  }
 0x134   : > { %1735 = vmatprep.subr.bf16.mxu1 %v1938_v42 }
 0x137   : > { %1736 = vmatpush3.bf16.msra.mxu1 %v1938_v42  ;;  %v1968_v42 = vld [vmem:[%s2471_s5 + $0xa8] sm:$0xff]  }
 0x138   : > { %1741 = vmatprep.subr.bf16.mxu1 %v1939_v43 }
 0x13a   : > { %1738 = vmatmul.mubr.bf16.vlgmr.msra.gmra.mrb[0].mxu1 %v457_v48  ;;  %v1971_v48 = vld [vmem:[#allocation3] sm:$0xff]  }
 0x13b   : > { %1742 = vmatpush3.bf16.msra.mxu1 %v1939_v43  ;;  %1757 = vmatprep.mubr.bf16.mxu1 %v695_v50  ;;  %v1969_v43 = vld [vmem:[%s2471_s5 + $0xb0] sm:$0xff]   ;;  %v1973_v50 = vld [vmem:[#allocation3 + $0x10] sm:$0xff]  }
 0x13c   : > { %1743 = vmatprep.subr.bf16.mxu1 %v1940_v49 }
 0x13f   : > { %1744 = vmatpush3.bf16.msra.mxu1 %v1940_v49  ;;  %v1972_v49 = vld [vmem:[#allocation3 + $0x8] sm:$0xff]  }
 0x140   : > { %1745 = vmatprep.subr.bf16.mxu1 %v1941_v51 }
 0x143   : > { %1746 = vmatpush3.bf16.msra.mxu1 %v1941_v51  ;;  %v1974_v51 = vld [vmem:[#allocation3 + $0x18] sm:$0xff]  }
 0x144   : > { %1747 = vmatprep.subr.bf16.mxu1 %v1942_v52 }
 0x147   : > { %1748 = vmatpush3.bf16.msra.mxu1 %v1942_v52  ;;  %v1975_v52 = vld [vmem:[#allocation3 + $0x20] sm:$0xff]  }
 0x148   : > { %1749 = vmatprep.subr.bf16.mxu1 %v1943_v53 }
 0x14b   : > { %1750 = vmatpush3.bf16.msra.mxu1 %v1943_v53  ;;  %v1976_v53 = vld [vmem:[#allocation3 + $0x28] sm:$0xff]  }
 0x14c   : > { %1751 = vmatprep.subr.bf16.mxu1 %v1944_v54 }
 0x14f   : > { %1752 = vmatpush3.bf16.msra.mxu1 %v1944_v54  ;;  %v1977_v54 = vld [vmem:[#allocation3 + $0x30] sm:$0xff]  }
 0x150   : > { %1753 = vmatprep.subr.bf16.mxu1 %v1945_v55 }
 0x153   : > { %1754 = vmatpush3.bf16.msra.mxu1 %v1945_v55  ;;  %v1978_v55 = vld [vmem:[#allocation3 + $0x38] sm:$0xff]  }
 0x154   : > { %1755 = vmatprep.subr.bf16.mxu1 %v1946_v56 }
 0x157   : > { %1756 = vmatpush3.bf16.msra.mxu1 %v1946_v56  ;;  %v1607_v56 = vld [vmem:[%s2472_s6] ss:$0 sm:$0xff] }
 0x158   : > { %1821 = vmatprep.subr.bf16.mxu1 %v2082_v12 }
 0x15a   : > { %1758 = vmatmul.mubr.bf16.vlgmr.msra.gmra.mrb[0].mxu1 %v696_v59 }
 0x15b   : > { %1822 = vmatpush3.bf16.msra.mxu1 %v1971_v48  ;;  %1837 = vmatprep.mubr.msk.bf16.mxu1 %vm2083_vm2, %v2082_v12 }
 0x15c   : > { %1823 = vmatprep.subr.bf16.mxu1 %v2082_v12 }
 0x15f   : > { %1824 = vmatpush3.bf16.msra.mxu1 %v1972_v49 }
 0x160   : > { %1825 = vmatprep.subr.bf16.mxu1 %v2082_v12 }
 0x163   : > { %1826 = vmatpush3.bf16.msra.mxu1 %v1973_v50 }
 0x164   : > { %1827 = vmatprep.subr.bf16.mxu1 %v2082_v12 }
 0x167   : > { %1828 = vmatpush3.bf16.msra.mxu1 %v1974_v51 }
 0x168   : > { %1829 = vmatprep.subr.bf16.mxu1 %v2082_v12 }
 0x16b   : > { %1830 = vmatpush3.bf16.msra.mxu1 %v1975_v52 }
 0x16c   : > { %1831 = vmatprep.subr.bf16.mxu1 %v2082_v12 }
 0x16f   : > { %1832 = vmatpush3.bf16.msra.mxu1 %v1976_v53 }
 0x170   : > { %1833 = vmatprep.subr.bf16.mxu1 %v2082_v12 }
 0x173   : > { %1834 = vmatpush3.bf16.msra.mxu1 %v1977_v54 }
 0x174   : > { %1835 = vmatprep.subr.bf16.mxu1 %v2082_v12 }
 0x177   : > { %1836 = vmatpush3.bf16.msra.mxu1 %v1978_v55 }
 0x22d   : > { %v1759_v2 = vpop.f32.mrb[0].mxu1 }
 0x22e   : > { %v824_v3 = vadd.f32 %v1759_v2, %v1550_v1  ;;  %v796_v4 = vpop.f32.mrb[1].mxu1 }
 0x22f   : > { %v822_v5 = vadd.f32 %v1550_v1, %v796_v4  ;;  %v1760_v6 = vpop.f32.mrb[2].mxu1 }
 0x230   : > { %v828_v7 = vmax.f32 %v824_v3, 0.0  ;;  %v825_v8 = vadd.f32 %v1760_v6, %v1550_v1  ;;  %v799_v9 = vpop.f32.mrb[3].mxu1 }
 0x231   : > { %v826_v10 = vmax.f32 %v822_v5, 0.0  ;;  %v823_v11 = vadd.f32 %v1550_v1, %v799_v9 }
 0x232   : > { %832 = vst [vmem:[#allocation2 + $0x19] sm:$0xff] %v828_v7  ;;  %v829_v13 = vmax.f32 %v825_v8, 0.0 }
 0x233   : > { %830 = vst [vmem:[#allocation2 + $0x1] sm:$0xff] %v826_v10  ;;  %v827_v14 = vmax.f32 %v823_v11, 0.0 }
 0x234   : > { %833 = vst [vmem:[#allocation2 + $0x21] sm:$0xff] %v829_v13  ;;  %v861_v15 = vpack.c.bf16 %v829_v13, %v828_v7 }
 0x235   : > { %831 = vst [vmem:[#allocation2 + $0x9] sm:$0xff] %v827_v14  ;;  %v860_v16 = vpack.c.bf16 %v827_v14, %v826_v10 }
 0x237   : > { %1777 = vmatprep.mubr.bf16.mxu0 %v860_v16 }
 0x238   : > { %1778 = vmatmul.mubr.bf16.vlgmr.msra.gmra.mrb[4].mxu0 %v861_v15 }
 0x239   : > { %1782 = vmatpush3.bf16.msra.mxu0 %v1955_v0  ;;  %v836_v35 = vld [vmem:[#allocation2 + $0x18] sm:$0xff] }
 0x23a   : > { %1783 = vmatprep.subr.bf16.mxu0 %v1956_v17  ;;  %v834_v19 = vld [vmem:[#allocation2] sm:$0xff] }
 0x23b   : > { %v837_v32 = vld [vmem:[#allocation2 + $0x20] sm:$0xff] }
 0x23c   : > { %v835_v20 = vld [vmem:[#allocation2 + $0x8] sm:$0xff]  ;;  %v839_v36 = vpack.c.bf16 %v837_v32, %v836_v35  ;;  %v1075_v45 = vld [vmem:[#allocation2 + $0x1a] sm:$0xff]  ;;  %v2085_v32 = vmov 0  }
 0x23d   : > { %v838_v21 = vpack.c.bf16 %v835_v20, %v834_v19  ;;  %1784 = vmatpush3.bf16.msra.mxu0 %v1956_v17  ;;  %v1073_v33 = vld [vmem:[#allocation2 + $0x2] sm:$0xff]  ;;  %v1074_v34 = vld [vmem:[#allocation2 + $0xa] sm:$0xff]  ;;  %1919 = vset.pattern.permute.xlu1 %v2085_v32 }
 0x23e   : > { %1785 = vmatprep.subr.bf16.mxu0 %v1957_v18  ;;  %v1077_v38 = vpack.c.bf16 %v1074_v34, %v1073_v33  ;;  %v1076_v46 = vld [vmem:[#allocation2 + $0x22] sm:$0xff]  ;;  %v1608_v33 = vld [vmem:[%s2474_s8] ss:$0 sm:$0xff] }
 0x23f   : > { %1797 = vmatprep.mubr.bf16.mxu0 %v838_v21  ;;  %v1078_v47 = vpack.c.bf16 %v1076_v46, %v1075_v45 }
 0x241   : > { %1786 = vmatpush3.bf16.msra.mxu0 %v1957_v18 }
 0x242   : > { %1787 = vmatprep.subr.bf16.mxu0 %v1958_v22 }
 0x245   : > { %1788 = vmatpush3.bf16.msra.mxu0 %v1958_v22 }
 0x246   : > { %1789 = vmatprep.subr.bf16.mxu0 %v1959_v23 }
 0x249   : > { %1790 = vmatpush3.bf16.msra.mxu0 %v1959_v23 }
 0x24a   : > { %1791 = vmatprep.subr.bf16.mxu0 %v1960_v25 }
 0x24d   : > { %1792 = vmatpush3.bf16.msra.mxu0 %v1960_v25 }
 0x24e   : > { %1793 = vmatprep.subr.bf16.mxu0 %v1961_v26 }
 0x251   : > { %1794 = vmatpush3.bf16.msra.mxu0 %v1961_v26 }
 0x252   : > { %1795 = vmatprep.subr.bf16.mxu0 %v1962_v28 }
 0x255   : > { %1796 = vmatpush3.bf16.msra.mxu0 %v1962_v28 }
 0x256   : > { %1801 = vmatprep.subr.bf16.mxu0 %v1963_v31 }
 0x258   : > { %1798 = vmatmul.mubr.bf16.vlgmr.msra.gmra.mrb[4].mxu0 %v839_v36 }
 0x259   : > { %1802 = vmatpush3.bf16.msra.mxu0 %v1963_v31  ;;  %1817 = vmatprep.mubr.bf16.mxu0 %v1077_v38  ;;  %v2084_v31 = vmov 1  }
 0x25a   : > { %1803 = vmatprep.subr.bf16.mxu0 %v1964_v37  ;;  %1917 = vset.pattern.permute.xlu0 %v2084_v31 }
 0x25d   : > { %1804 = vmatpush3.bf16.msra.mxu0 %v1964_v37 }
 0x25e   : > { %1805 = vmatprep.subr.bf16.mxu0 %v1965_v39 }
 0x261   : > { %1806 = vmatpush3.bf16.msra.mxu0 %v1965_v39 }
 0x262   : > { %1807 = vmatprep.subr.bf16.mxu0 %v1966_v40 }
 0x265   : > { %1808 = vmatpush3.bf16.msra.mxu0 %v1966_v40 }
 0x266   : > { %1809 = vmatprep.subr.bf16.mxu0 %v1967_v41 }
 0x269   : > { %1810 = vmatpush3.bf16.msra.mxu0 %v1967_v41 }
 0x26a   : > { %1811 = vmatprep.subr.bf16.mxu0 %v1968_v42 }
 0x26d   : > { %1812 = vmatpush3.bf16.msra.mxu0 %v1968_v42 }
 0x26e   : > { %1813 = vmatprep.subr.bf16.mxu0 %v1969_v43 }
 0x271   : > { %1814 = vmatpush3.bf16.msra.mxu0 %v1969_v43  ;;  %v2086_v43 = vmov 2  }
 0x272   : > { %1815 = vmatprep.subr.bf16.mxu0 %v1970_v44 }
 0x275   : > { %1816 = vmatpush3.bf16.msra.mxu0 %v1970_v44 }
 0x278   : > { %1818 = vmatmul.mubr.bf16.vlgmr.msra.gmra.mrb[4].mxu0 %v1078_v47 }
 0x34b   : > { %v1819_v57 = vpop.f32.mrb[4].mxu0 }
 0x34c   : > { %v1206_v58 = vadd.f32 %v1819_v57, %v1607_v56  ;;  %v1178_v59 = vpop.f32.mrb[5].mxu0 }
 0x34d   : > { %v1204_v60 = vadd.f32 %v1607_v56, %v1178_v59  ;;  %v1820_v61 = vpop.f32.mrb[6].mxu0 }
 0x34e   : > { %v1210_v62 = vadd.f32 %v1206_v58, %v2276_v24  ;;  %v1207_v63 = vadd.f32 %v1820_v61, %v1607_v56  ;;  %v1181_v0 = vpop.f32.mrb[7].mxu0 }
 0x34f   : > { %v1208_v1 = vadd.f32 %v1204_v60, %v2278_v27  ;;  %v1205_v2 = vadd.f32 %v1607_v56, %v1181_v0 }
 0x350   : > { %v1211_v3 = vadd.f32 %v1207_v63, %v2281_v29  ;;  %v1214_v4 = vmax.f32 %v1210_v62, 0.0 }
 0x351   : > { %v1209_v12 = vadd.f32 %v1205_v2, %v2284_v30  ;;  %v1212_v6 = vmax.f32 %v1208_v1, 0.0 }
 0x352   : > { %v1215_v5 = vmax.f32 %v1211_v3, 0.0 }
 0x353   : > { %v1213_v7 = vmax.f32 %v1209_v12, 0.0 }
 0x354   : > { %v1223_v8 = vadd.f32 %v1215_v5, %v1214_v4 }
 0x355   : > { %v1216_v9 = vadd.f32 %v1213_v7, %v1212_v6 }
 0x356   : > { %v1224_v10 = vrot.slane %v1223_v8, 4 }
 0x357   : > { %v1217_v11 = vrot.slane %v1216_v9, 4 }
 0x358   : > { %v1225_v13 = vadd.f32 %v1224_v10, %v1223_v8 }
 0x359   : > { %v1218_v14 = vadd.f32 %v1217_v11, %v1216_v9 }
 0x35a   : > { %v1226_v24 = vrot.slane %v1225_v13, 2 }
 0x35b   : > { %v1219_v15 = vrot.slane %v1218_v14, 2 }
 0x35c   : > { %v1227_v16 = vadd.f32 %v1226_v24, %v1225_v13 }
 0x35d   : > { %v1220_v17 = vadd.f32 %v1219_v15, %v1218_v14 }
 0x35e   : > { %v1228_v27 = vrot.slane %v1227_v16, 1 }
 0x35f   : > { %v1221_v18 = vrot.slane %v1220_v17, 1 }
 0x360   : > { %v1229_v19 = vadd.f32 %v1228_v27, %v1227_v16 }
 0x361   : > { %v1222_v29 = vadd.f32 %v1221_v18, %v1220_v17 }
 0x362   : > { %v1231_v20 = vmul.f32 0.0625, %v1229_v19 }
 0x363   : > { %v1230_v30 = vmul.f32 0.0625, %v1222_v29 }
 0x364   : > { %v1233_v21 = vpack.c.bf16 %v1231_v20, %v1231_v20 }
 0x365   : > { %v1232_v22 = vpack.c.bf16 %v1230_v30, %v1230_v30 }
 0x366   : > { %v1260_v23 = vunpack.c.l.b16 %v1233_v21 }
 0x367   : > { %v1259_v25 = vunpack.c.l.b16 %v1232_v22 }
 0x369   : > { %v1262_v26 = vsel %vm1261_vm3, %v1260_v23, %v1259_v25 }
 0x36a   : > { %v1263_v28 = vpack.c.b16 %v1262_v26, %v1262_v26 }
 0x36c   : > { %1838 = vmatmul.mubr.bf16.vlgmr.msra.gmra.mrb[4].mxu1 %v1263_v28 }
 0x43f   : > { %v1347_v34 = vpop.f32.mrb[4].mxu1 }
 0x440   : > { %v1348_v35 = vadd.f32 %v1608_v33, %v1347_v34  ;;  %v1839_v36 = vpop.f32.mrb[5].mxu1 }
 0x441   : > { %v1350_v37 = vpop.f32.mrb[6].mxu1 }
 0x442   : > { %v1617_v38 = vmul.f32 -1.442695, %v1348_v35  ;;  %v1840_v39 = vpop.f32.mrb[7].mxu1 }
 0x444   : > { %1979 = vpow2.f32 %v1617_v38 }
 0x44e   : > { %v1980_v40 = vpop.eup %1979 }
 0x44f   : > { %v1356_v41 = vadd.f32 1.0, %v1980_v40 }
 0x451   : > { %1981 = vrcp.f32 %v1356_v41 }
 0x45b   : > { %v1982_v42 = vpop.eup %1981 }
 0x45c   : > { %1361 = vperm.xlu1 %1919, %v1982_v42   ;;  %1367 = vperm.xlu0 %1917, %v1982_v42  }
 0x460   : > { %1918 = vset.pattern.permute.xlu0 %v2086_v43 }
 0x461   : > { %1377 = vperm.xlu0 %1918, %v1982_v42  }
 0x4db   : > { %v1368_v44 = vpop.permute.xlu0 %1367  ;;  %v1362_v48 = vpop.permute.xlu1 %1361 }
 0x4dc   : > { %v1370_v45 = vmul.f32 %v1368_v44, %v1348_v35  ;;  %v1364_v50 = vmul.f32 %v1362_v48, %v1348_v35 }
 0x4de   : > { %1372 = vrot.lane.b32.xlu1 %v1370_v45, %s2087_s14 }
 0x4e0   : > { %v1378_v46 = vpop.permute.xlu0 %1377 }
 0x4e1   : > { %v1380_v47 = vmul.f32 %v1378_v46, %v1348_v35 }
 0x4e3   : > { %1382 = vrot.lane.b32.xlu1 %v1380_v47, %s2088_s16 }
 0x550   : > { %v1373_v49 = vpop.permute.xlu1 %1372 }
 0x551   : > { %v1375_v51 = vadd.f32 %v1373_v49, %v1364_v50 }
 0x555   : > { %v1383_v52 = vpop.permute.xlu1 %1382 }
 0x556   : > { %v1385_v53 = vadd.f32 %v1383_v52, %v1375_v51 }
 0x558   : > { %1387 = vrot.lane.b32.xlu0 %v1385_v53, %s2087_s14  ;;  %s2015_s14 = sshll.u32 %s2089_s13, 4  ;;  %s2016_s14 = int_to_ptr.vmem [resolvable:$false] %s2015_s14 }
 0x559   : > { %s2017_s16 = scalar_lea.vmem %s2016_s14, 64  ;;  %p2018_p2 = scmp.lt.s32.totalorder %s2426_s25, %s2016_s14 }
 0x55a   : > { %p2019_p3 = scmp.lt.s32.totalorder %s2017_s16, %s2011_s24 }
 0x55c   : > { %p2020_p4 = por %p2019_p3, %p2018_p2 }
 0x55e   : > { %p2021_p7 = pnand %p2020_p4, %p2014_p12 }
 0x5ca   : > { %v1388_v54 = vpop.permute.xlu0 %1387 }
 0x5cb   : > { %v1391_v55 = vsel %vm1390_vm4, %v1388_v54, 0.0 }
 0x5cc   : > { %1392 = vst [vmem:[%s343_s22] sm:$0x3] %v1391_v55 }
 0x5cd   : > { %2024 = shalt.err (!%p2021_p7)
}
 0x5ce   : > { %s2025_s23 = scalar_lea.hbm %s2424_s27, 32  ;;  %s2029_s22 = scalar_lea.hbm %s2475_s9, 64 }
 0x5cf   : > { %p2026_p8 = scmp.ne.s32.totalorder %s2424_s27, %s2025_s23  ;;  %p2030_p1 = scmp.lt.u32.totalorder %s2424_s27, %s2475_s9 }
 0x5d0   : > { %p2031_p0 = scmp.lt.u32.totalorder %s2029_s22, %s2025_s23  ;;  %p2033_p6 = scmp.lt.u32.totalorder %s2025_s23, %s2424_s27 }
 0x5d1   : > { %p2027_p11 = pnand %p2026_p8, %p2486_p9 }
 0x5d2   : > { %p2032_p5 = por %p2031_p0, %p2030_p1 }
 0x5d3   : > { %p2028_p13 = pneg %p2027_p11 }
 0x5d4   : > { %p2034_p10 = por %p2033_p6, %p2032_p5 }
 0x5d6   : > { %p2035_p12 = pnand %p2034_p10, %p2028_p13 }
 0x5d8   : > { %2038 = shalt.err (!%p2035_p12)
}
 0x5d9   : > { %1862 = dma.vmem_to_hbm [thread:$0]  (%p2486_p9), %s2426_s25, 32, %s2424_s27, %s1394_s29  }
 0x5da PF: > { %p1874_p2 = scmp.ge.s32.totalorder %s2077_s12, 2  ;;  %s1419_s24 = sand.u32 1, %s2065_s30  }
 0x5db   : > { %p2487_p3 = scmp.ne.s32.totalorder %s2480_s20, 0  ;;  %s1420_s13 = scalar_lea.sflag [#allocation5], %s1419_s24 }
 0x5dd   : > { %p1869_p4 = pnand %p1874_p2, %p2487_p3 }
 0x5df   : > { %2060 = dma.done.wait (!%p1869_p4), %s1420_s13, 32  }
 0x5e0   : > { %2062 = vsyncadd (!%p1869_p4), %s1420_s13, 4294967264  ;;  %p20_p7 = scmp.ge.s32.totalorder %s2165_s15, 4   ;;  %s2488_s30 = smov %s2069_s10 }
 0x5e1   : > { %s2489_s10 = smov %s2073_s11  ;;  %s2490_s11 = smov %s2176_s18 }
 0x5e2   : > { %s2491_s12 = smov %s2165_s15  ;;  %22 = sbr.rel (!%p20_p7) target bundleno = 4 (0x4), region = 100 }
 0x5e9   :  { %1425 = vsyncpa [#allocation4], 1 }
 0x5ea   :  { %1427 = vsyncpa [#allocation4 + $0x1], 1 }
 0x5eb   :  { %1428 = vsyncpa [#allocation5], 1 }
 0x5ec   :  { %1430 = vsyncpa [#allocation5 + $0x1], 1 }

</bundles_post_ra>
